<compile_context>
chip_gen: v5e
topology: v5e:2x2
jax: 0.10.0
libtpu: 0.0.40
codegen_flags: <defaults>
</compile_context>

<pallas_src>
import functools

import jax
import jax.numpy as jnp
from jax import lax
from jax.experimental import pallas as pl
from jax.experimental.pallas import tpu as pltpu

_LANES = 128
_SUBLANES = 8
_MAX_TILE_ROWS = 8192                 # (8192, 128) f32 block = 4 MiB / input / buffer
_VMEM_LIMIT_BYTES = 32 * 1024 * 1024  # explicit: safe on v5e/v6e/v7x
_NUM_SPLITS = 2                       # leading "parallel" axis (both TCs on v7x)


def _simse_partial_kernel(pred_ref, real_ref, out_ref, *,
                          tile_rows, blocks_per_split, valid_rows,
                          mask_from, needs_mask):
    """Accumulate a per-core (8, 128) partial sum of (real - pred).

    pred_ref, real_ref : VMEM (tile_rows, 128) tiles (native dtype)
    out_ref            : VMEM (1, 8, 128) f32 -- per-core resident accumulator
    """
    c = pl.program_id(0)   # split (core) axis   -- "parallel"
    i = pl.program_id(1)   # block walk per core -- "arbitrary"

    @pl.when(i == 0)
    def _():
        out_ref[...] = jnp.zeros_like(out_ref)

    diff = real_ref[...].astype(jnp.float32) - pred_ref[...].astype(jnp.float32)

    def _accumulate(d):
        # (tile_rows, 128) -> (tile_rows//8, 8, 128) -> sum over leading axis:
        # pure cross-vreg VALU adds, no XLU, no extra VMEM traffic.
        partial = d.reshape(-1, _SUBLANES, _LANES).sum(axis=0)
        out_ref[...] += partial.reshape(1, _SUBLANES, _LANES)

    if needs_mask:
        gstep = c * blocks_per_split + i

        @pl.when(gstep < mask_from)
        def _():
            _accumulate(diff)

        @pl.when(gstep >= mask_from)
        def _():
            # Partial last block and/or clamped overhang step: zero out rows
            # beyond the valid range (also covers garbage in the padded tile).
            row = gstep * tile_rows + lax.broadcasted_iota(
                jnp.int32, (tile_rows, _LANES), 0)
            _accumulate(jnp.where(row < valid_rows, diff, jnp.float32(0.0)))
    else:
        _accumulate(diff)


def simse(pred: jax.Array, real: jax.Array, *,
          max_tile_rows: int = _MAX_TILE_ROWS) -> jax.Array:
    """Scale-invariant MSE: ((sum(real - pred)) / numel)**2, returns f32 scalar."""
    assert pred.shape == real.shape, "pred/real must have identical shapes"
    n = pred.size
    inv_n = 1.0 / float(n)  # exact in double, rounded once to f32 below

    pred_f = pred.reshape(-1)
    real_f = real.reshape(-1)

    rows = n // _LANES
    rows_main = (rows // _SUBLANES) * _SUBLANES   # multiple of 8 -> clean (8,128) tiles
    main = rows_main * _LANES

    total = jnp.float32(0.0)

    if main < n:
        # Tiny tail (< 8*128 + 127 elements): reduce in plain JAX.
        total = total + (
            jnp.sum(real_f[main:].astype(jnp.float32))
            - jnp.sum(pred_f[main:].astype(jnp.float32))
        )

    if rows_main > 0:
        pred2d = pred_f[:main].reshape(rows_main, _LANES)
        real2d = real_f[:main].reshape(rows_main, _LANES)

        tile_rows = min(max_tile_rows, rows_main)
        tile_rows = max(_SUBLANES, (tile_rows // _SUBLANES) * _SUBLANES)

        num_blocks = pl.cdiv(rows_main, tile_rows)
        num_splits = _NUM_SPLITS if num_blocks >= _NUM_SPLITS else 1
        blocks_per_split = pl.cdiv(num_blocks, num_splits)
        total_steps = num_splits * blocks_per_split

        partial_last = (rows_main % tile_rows) != 0
        mask_from = (num_blocks - 1) if partial_last else num_blocks
        needs_mask = mask_from < total_steps

        if total_steps == num_blocks:
            in_map = lambda c, i: (c * blocks_per_split + i, 0)
        else:
            # Odd block count: last core has one overhang step; clamp its block
            # index to stay in-bounds (its contribution is fully masked).
            in_map = lambda c, i: (
                jnp.minimum(c * blocks_per_split + i, num_blocks - 1), 0)

        kernel = functools.partial(
            _simse_partial_kernel,
            tile_rows=tile_rows,
            blocks_per_split=blocks_per_split,
            valid_rows=rows_main,
            mask_from=mask_from,
            needs_mask=needs_mask,
        )

        bytes_in = main * (pred2d.dtype.itemsize + real2d.dtype.itemsize)
        cost = pl.CostEstimate(
            flops=2 * main,  # one sub + one add per element
            transcendentals=0,
            bytes_accessed=bytes_in + num_splits * _SUBLANES * _LANES * 4,
        )

        partials = pl.pallas_call(
            kernel,
            out_shape=jax.ShapeDtypeStruct(
                (num_splits, _SUBLANES, _LANES), jnp.float32),
            grid_spec=pltpu.PrefetchScalarGridSpec(
                num_scalar_prefetch=0,
                grid=(num_splits, blocks_per_split),
                in_specs=[
                    pl.BlockSpec((tile_rows, _LANES), in_map),
                    pl.BlockSpec((tile_rows, _LANES), in_map),
                ],
                out_specs=pl.BlockSpec(
                    (1, _SUBLANES, _LANES), lambda c, i: (c, 0, 0)),
            ),
            compiler_params=pltpu.CompilerParams(
                # Split axis across cores (v7x); block walk is a running
                # accumulation -> sequential.
                dimension_semantics=("parallel", "arbitrary"),
                vmem_limit_bytes=_VMEM_LIMIT_BYTES,
            ),
            cost_estimate=cost,
        )(pred2d, real2d)

        total = total + jnp.sum(partials)

    # (s / n)**2 with 1/n computed exactly on the host side.
    return (total * jnp.float32(inv_n)) ** 2


def _simse_ref(pred, real):
    d = real.astype(jnp.float32) - pred.astype(jnp.float32)
    n = d.size
    return (jnp.sum(d) / n) ** 2


if __name__ == "__main__":
    key = jax.random.PRNGKey(0)
    k1, k2, k3, k4 = jax.random.split(key, 4)

    # NCHW feature maps, small shapes: batch=2, channels=4, spatial=16x16.
    pred = jax.random.normal(k1, (2, 4, 16, 16), dtype=jnp.float32)
    real = jax.random.normal(k2, (2, 4, 16, 16), dtype=jnp.float32)

    out = simse(pred, real)
    jax.block_until_ready(out)
    ref = _simse_ref(pred, real)
    assert jnp.allclose(out, ref, rtol=1e-5, atol=1e-6), (out, ref)

    # Ragged shape with a reduced tile size to exercise the split / clamped
    # overhang / masked partial-block / wrapper-tail paths.
    pred2 = jax.random.normal(k3, (2, 5, 11, 47), dtype=jnp.float32)
    real2 = jax.random.normal(k4, (2, 5, 11, 47), dtype=jnp.float32)
    out2 = simse(pred2, real2, max_tile_rows=16)
    jax.block_until_ready(out2)
    ref2 = _simse_ref(pred2, real2)
    assert jnp.allclose(out2, ref2, rtol=1e-5, atol=1e-6), (out2, ref2)

    print("KERNEL_OK")
</pallas_src>

<mosaic_0001>
module attributes {stable_mosaic.version = 11 : i64} {
  func.func @_simse_partial_kernel(%arg0: i32, %arg1: i32, %arg2: memref<16x128xf32, #tpu.memory_space<vmem>>, %arg3: memref<16x128xf32, #tpu.memory_space<vmem>>, %arg4: memref<1x8x128xf32, #tpu.memory_space<vmem>>) attributes {dimension_semantics = [#tpu.dimension_semantics<parallel>, #tpu.dimension_semantics<arbitrary>], iteration_bounds = array<i64: 1, 1>, scalar_prefetch = 0 : i64, scratch_operands = 0 : i64, tpu.core_type = #tpu.core_type<tc>, window_params = [{transform_indices = @transform_0, window_bounds = array<i64: 16, 128>}, {transform_indices = @transform_1, window_bounds = array<i64: 16, 128>}, {transform_indices = @transform_2, window_bounds = array<i64: 1, 8, 128>}]} {
    %c0_i32 = arith.constant 0 : i32
    %0 = arith.cmpi eq, %arg1, %c0_i32 : i32
    %1 = arith.extui %0 : i1 to i32
    %c0_i32_0 = arith.constant 0 : i32
    %2 = arith.cmpi ne, %1, %c0_i32_0 : i32
    scf.if %2 {
      %cst_10 = arith.constant 0.000000e+00 : f32
      %12 = vector.broadcast %cst_10 : f32 to vector<1x8x128xf32>
      %c0_11 = arith.constant 0 : index
      %c0_12 = arith.constant 0 : index
      %c0_13 = arith.constant 0 : index
      %13 = vector.load %arg4[%c0_11, %c0_12, %c0_13] : memref<1x8x128xf32, #tpu.memory_space<vmem>>, vector<1x8x128xf32>
      tpu.vector_store %arg4[%c0_11, %c0_12, %c0_13], %12 {strides = array<i32>} : memref<1x8x128xf32, #tpu.memory_space<vmem>>, vector<1x8x128xf32>,
    } else {
    }
    %c0 = arith.constant 0 : index
    %c0_1 = arith.constant 0 : index
    %3 = vector.load %arg3[%c0, %c0_1] : memref<16x128xf32, #tpu.memory_space<vmem>>, vector<16x128xf32>
    %c0_2 = arith.constant 0 : index
    %c0_3 = arith.constant 0 : index
    %4 = vector.load %arg2[%c0_2, %c0_3] : memref<16x128xf32, #tpu.memory_space<vmem>>, vector<16x128xf32>
    %5 = arith.subf %3, %4 : vector<16x128xf32>
    %6 = vector.shape_cast %5 : vector<16x128xf32> to vector<2x8x128xf32>
    %cst = arith.constant dense<0.000000e+00> : vector<8x128xf32>
    %7 = vector.multi_reduction <add>, %6, %cst [0] : vector<2x8x128xf32> to vector<8x128xf32>
    %c0_4 = arith.constant 0 : index
    %c0_5 = arith.constant 0 : index
    %c0_6 = arith.constant 0 : index
    %8 = vector.load %arg4[%c0_4, %c0_5, %c0_6] : memref<1x8x128xf32, #tpu.memory_space<vmem>>, vector<1x8x128xf32>
    %9 = vector.shape_cast %7 : vector<8x128xf32> to vector<1x8x128xf32>
    %10 = arith.addf %8, %9 : vector<1x8x128xf32>
    %c0_7 = arith.constant 0 : index
    %c0_8 = arith.constant 0 : index
    %c0_9 = arith.constant 0 : index
    %11 = vector.load %arg4[%c0_7, %c0_8, %c0_9] : memref<1x8x128xf32, #tpu.memory_space<vmem>>, vector<1x8x128xf32>
    tpu.vector_store %arg4[%c0_7, %c0_8, %c0_9], %10 {strides = array<i32>} : memref<1x8x128xf32, #tpu.memory_space<vmem>>, vector<1x8x128xf32>,
    return
  }
  func.func @transform_0(%arg0: i32, %arg1: i32) -> (i32, i32) {
    %c1_i32 = arith.constant 1 : i32
    %0 = arith.muli %arg0, %c1_i32 : i32
    %1 = arith.addi %0, %arg1 : i32
    %c0_i32 = arith.constant 0 : i32
    %c0_i32_0 = arith.constant 0 : i32
    return %1, %c0_i32 : i32, i32
  }
  func.func @transform_1(%arg0: i32, %arg1: i32) -> (i32, i32) {
    %c1_i32 = arith.constant 1 : i32
    %0 = arith.muli %arg0, %c1_i32 : i32
    %1 = arith.addi %0, %arg1 : i32
    %c0_i32 = arith.constant 0 : i32
    %c0_i32_0 = arith.constant 0 : i32
    return %1, %c0_i32 : i32, i32
  }
  func.func @transform_2(%arg0: i32, %arg1: i32) -> (i32, i32, i32) {
    %c0_i32 = arith.constant 0 : i32
    %c0_i32_0 = arith.constant 0 : i32
    %c0_i32_1 = arith.constant 0 : i32
    return %arg0, %c0_i32, %c0_i32_0 : i32, i32, i32
  }
}

</mosaic_0001>

<bundles_post_ra>
// kernel: tpu_custom_call.1
= control target key start
LH: loop header
LB: loop body
LE: loop exit
PB: predicated region body
PF: predicated region fallthrough
CT: control target
= control target key end

     0   :  { %7 = vsyncpa [#allocation3], 0  ;;  %s202_s0 = inlined_call_operand.hbm [shape: f32[16,128], index: 0, kind: input, shape index: {}]   ;;  %s203_s1 = inlined_call_operand.hbm [shape: f32[16,128], index: 1, kind: input, shape index: {}]   ;;  %s204_s2 = inlined_call_operand.hbm [shape: f32[1,8,128], index: 2, kind: output, shape index: {}]  }
   0x1   :  { %8 = vsyncpa [#allocation6], 0 }
   0x2   :  { %9 = vsyncpa [#allocation4], 0  ;;  %s18_s11 = sshll.u32 %s202_s0, 4  ;;  %s173_s12 = smov [#allocation2]   ;;  %s19_s11 = int_to_ptr.hbm [resolvable:$true] %s18_s11 }
   0x3   :  { %s20_s13 = sshll.u32 %s173_s12, 4  ;;  %s35_s16 = sshll.u32 %s203_s1, 4  ;;  %s21_s13 = int_to_ptr.vmem [resolvable:$true] %s20_s13  ;;  %s36_s16 = int_to_ptr.hbm [resolvable:$true] %s35_s16 }
   0x4   :  { %s174_s17 = smov 128   ;;  %s175_s18 = smov 8  }
   0x5   :  { %26 = dma.hbm_to_vmem [thread:$0]  %s19_s11, 256, %s21_s13, [#allocation3], %s174_s17, %s174_s17, %s175_s18  }
   0x6   :  { %s176_s19 = smov [#allocation5]  }
   0x7   :  { %s37_s20 = sshll.u32 %s176_s19, 4  ;;  %s38_s20 = int_to_ptr.vmem [resolvable:$true] %s37_s20 }
   0x8   :  { %43 = dma.hbm_to_vmem [thread:$0]  %s36_s16, 256, %s38_s20, [#allocation6], %s174_s17, %s174_s17, %s175_s18  }
   0x9   :  { %167 = dma.done.wait [#allocation3], 256  }
   0xa   :  { %168 = vsyncadd [#allocation3], 4294967040 }
   0xb   :  { %169 = dma.done.wait [#allocation6], 256  }
   0xc   :  { %170 = vsyncadd [#allocation6], 4294967040  ;;  %v61_v0 = vld [vmem:[#allocation5] sm:$0xff]  ;;  %v62_v1 = vld [vmem:[#allocation5 + $0x8] sm:$0xff]  ;;  %s177_s0 = smov [#allocation7]   ;;  %s78_s23 = sshll.u32 %s204_s2, 4  ;;  %s79_s23 = int_to_ptr.hbm [resolvable:$true] %s78_s23 }
   0xd   :  { %v63_v2 = vld [vmem:[#allocation2] sm:$0xff]  ;;  %v64_v3 = vld [vmem:[#allocation2 + $0x8] sm:$0xff]  ;;  %s76_s1 = sshll.u32 %s177_s0, 4  ;;  %s77_s1 = int_to_ptr.vmem [resolvable:$true] %s76_s1 }
   0xe   :  { %v65_v4 = vsub.f32 %v61_v0, %v63_v2  ;;  %v66_v5 = vsub.f32 %v62_v1, %v64_v3 }
  0x10   :  { %v67_v6 = vadd.f32 %v66_v5, %v65_v4 }
  0x12   :  { %70 = vst [vmem:[#allocation7] sm:$0xff] %v67_v6 }
  0x13   :  { %81 = dma.vmem_to_hbm [thread:$0]  %s77_s1, 128, %s79_s23, [#allocation4]  }
  0x14   :  { %171 = dma.done.wait [#allocation4], 128  }
  0x15   :  { %172 = vsyncadd [#allocation4], 4294967168 }
  0x16   :  { %86 = vsyncpa [#allocation3], 1 }
  0x17   :  { %87 = vsyncpa [#allocation6], 1 }
  0x18   :  { %88 = vsyncpa [#allocation4], 1 }

</bundles_post_ra>
